<compile_context>
chip_gen: v5e
topology: v5e:2x2
jax: 0.10.0
libtpu: 0.0.40
codegen_flags: <defaults>
</compile_context>

<pallas_src>
import functools
from types import SimpleNamespace

import jax
import jax.numpy as jnp
from jax.experimental import pallas as pl
from jax.experimental.pallas import tpu as pltpu


# ----------------------------- per-generation tuning -------------------------

@functools.lru_cache(maxsize=None)
def _hw():
    """Generation-dependent tile targets / VMEM budget.

    v5e / v6e have 128 MiB VMEM (raise the scoped limit; v6e's ~680 FLOP/B machine
    balance wants tm~1024); v7x has 64 MiB physical (keep ~48 MiB, moderate tm).
    """
    vmem_cap = 64 * 1024 * 1024
    try:
        vmem_cap = int(pltpu.get_tpu_info().vmem_capacity_bytes)
    except Exception:
        pass
    kind = ""
    try:
        kind = jax.devices()[0].device_kind.lower()
    except Exception:
        pass
    big_vmem = vmem_cap >= 96 * 1024 * 1024
    if not big_vmem:  # v7x-like: 64 MiB physical VMEM
        return SimpleNamespace(tm=512, tnk=768, vmem=48 * 1024 * 1024)
    vmem_limit = min(100 * 1024 * 1024, int(vmem_cap * 0.8))
    if "v5" in kind:  # v5e: plenty of VMEM, lowest HBM BW
        return SimpleNamespace(tm=512, tnk=768, vmem=vmem_limit)
    return SimpleNamespace(tm=1024, tnk=1024, vmem=vmem_limit)  # v6e


def _pick_tile(dim, target, align):
    """Largest divisor of `dim` <= target, preferring multiples of 256 (full MXU
    pass width), else multiples of `align`; falls back to the full dim."""
    if dim <= target:
        return dim
    aligns = (256, align) if align < 256 else (align,)
    for a in aligns:
        start = target - (target % a)
        for cand in range(start, 0, -a):
            if dim % cand == 0:
                return cand
    return dim


# ----------------------------- tiled linear (+bias) --------------------------

def _linear_kernel(x_ref, w_ref, b_ref, o_ref, acc_ref, *, activation):
    @pl.when(pl.program_id(2) == 0)
    def _():
        acc_ref[...] = jnp.zeros_like(acc_ref)

    acc_ref[...] += jnp.dot(x_ref[...], w_ref[...],
                            preferred_element_type=jnp.float32)

    @pl.when(pl.program_id(2) == pl.num_programs(2) - 1)
    def _():
        y = acc_ref[...] + b_ref[...]
        if activation == "tanh":
            y = jnp.tanh(y)
        o_ref[...] = y.astype(o_ref.dtype)


def linear(x, w, b, activation=None, out_dtype=jnp.bfloat16):
    """x: [N, K] bf16, w: [K, M] bf16, b: [M] f32 -> [N, M] out_dtype."""
    cfg = _hw()
    N, K = x.shape
    M = w.shape[1]
    tm = _pick_tile(N, cfg.tm, 16)
    tn = _pick_tile(M, cfg.tnk, 128)
    tk = _pick_tile(K, cfg.tnk, 128)
    grid = (N // tm, M // tn, K // tk)
    # TODO(synk): if weight DMA is still exposed on v6e, add pipeline_mode=pl.Buffered(3)
    # to the weight BlockSpec.
    return pl.pallas_call(
        functools.partial(_linear_kernel, activation=activation),
        out_shape=jax.ShapeDtypeStruct((N, M), out_dtype),
        grid=grid,
        in_specs=[
            pl.BlockSpec((tm, tk), lambda i, j, k: (i, k)),
            pl.BlockSpec((tk, tn), lambda i, j, k: (k, j)),
            pl.BlockSpec((1, tn), lambda i, j, k: (0, j)),
        ],
        out_specs=pl.BlockSpec((tm, tn), lambda i, j, k: (i, j)),
        scratch_shapes=[pltpu.VMEM((tm, tn), jnp.float32)],
        compiler_params=pltpu.CompilerParams(
            dimension_semantics=("parallel", "parallel", "arbitrary"),
            vmem_limit_bytes=cfg.vmem),
    )(x, w, b.reshape(1, M).astype(jnp.float32))


# --------------- linear + bias + residual add + LayerNorm (fused epilogue) ----

def _linear_add_ln_kernel(x_ref, w_ref, b_ref, r_ref, g_ref, be_ref, o_ref,
                          acc_ref, *, eps):
    @pl.when(pl.program_id(1) == 0)
    def _():
        acc_ref[...] = jnp.zeros_like(acc_ref)

    acc_ref[...] += jnp.dot(x_ref[...], w_ref[...],
                            preferred_element_type=jnp.float32)

    @pl.when(pl.program_id(1) == pl.num_programs(1) - 1)
    def _():
        y = acc_ref[...] + b_ref[...] + r_ref[...].astype(jnp.float32)
        mean = jnp.mean(y, axis=-1, keepdims=True)
        var = jnp.mean(jnp.square(y - mean), axis=-1, keepdims=True)
        y = (y - mean) * jax.lax.rsqrt(var + eps)
        o_ref[...] = (y * g_ref[...] + be_ref[...]).astype(o_ref.dtype)


def linear_add_layernorm(x, w, b, residual, gamma, beta, eps=1e-12,
                         out_dtype=jnp.bfloat16):
    """LayerNorm(x @ w + b + residual): output projection with fused residual+LN."""
    cfg = _hw()
    N, K = x.shape
    H = w.shape[1]
    tm = _pick_tile(N, cfg.tm, 16)
    tk = _pick_tile(K, cfg.tnk, 128)
    grid = (N // tm, K // tk)
    return pl.pallas_call(
        functools.partial(_linear_add_ln_kernel, eps=eps),
        out_shape=jax.ShapeDtypeStruct((N, H), out_dtype),
        grid=grid,
        in_specs=[
            pl.BlockSpec((tm, tk), lambda i, k: (i, k)),
            pl.BlockSpec((tk, H), lambda i, k: (k, 0)),
            pl.BlockSpec((1, H), lambda i, k: (0, 0)),
            pl.BlockSpec((tm, H), lambda i, k: (i, 0)),
            pl.BlockSpec((1, H), lambda i, k: (0, 0)),
            pl.BlockSpec((1, H), lambda i, k: (0, 0)),
        ],
        out_specs=pl.BlockSpec((tm, H), lambda i, k: (i, 0)),
        scratch_shapes=[pltpu.VMEM((tm, H), jnp.float32)],
        compiler_params=pltpu.CompilerParams(
            dimension_semantics=("parallel", "arbitrary"),
            vmem_limit_bytes=cfg.vmem),
    )(x, w, b.reshape(1, H).astype(jnp.float32), residual,
      gamma.reshape(1, H), beta.reshape(1, H))


# ----------- fused FFN + residual + LayerNorm: LN(gelu(x@W1+b1)@W2 + b2 + x) ---

def _ffn_ln_kernel(x_ref, w1_ref, b1_ref, w2_ref, b2_ref, g_ref, be_ref, o_ref,
                   acc_ref, *, eps):
    @pl.when(pl.program_id(1) == 0)
    def _():
        acc_ref[...] = jnp.zeros_like(acc_ref)

    h = jnp.dot(x_ref[...], w1_ref[...], preferred_element_type=jnp.float32)
    # TODO(synk): HF BERT default is exact (erf) GELU; tanh approximation used here.
    h = jax.nn.gelu(h + b1_ref[...], approximate=True)
    acc_ref[...] += jnp.dot(h.astype(jnp.bfloat16), w2_ref[...],
                            preferred_element_type=jnp.float32)

    @pl.when(pl.program_id(1) == pl.num_programs(1) - 1)
    def _():
        # residual = the FFN input block itself (same (i,0) block at every j)
        y = acc_ref[...] + b2_ref[...] + x_ref[...].astype(jnp.float32)
        mean = jnp.mean(y, axis=-1, keepdims=True)
        var = jnp.mean(jnp.square(y - mean), axis=-1, keepdims=True)
        y = (y - mean) * jax.lax.rsqrt(var + eps)
        o_ref[...] = (y * g_ref[...] + be_ref[...]).astype(o_ref.dtype)


def ffn_add_layernorm(x, w1, b1, w2, b2, gamma, beta, eps=1e-12,
                      out_dtype=jnp.bfloat16):
    """LN(gelu(x@W1+b1)@W2 + b2 + x): whole FFN block in one kernel."""
    cfg = _hw()
    N, H = x.shape
    I = w1.shape[1]
    tm = _pick_tile(N, cfg.tm, 16)
    ti = _pick_tile(I, cfg.tnk, 128)
    grid = (N // tm, I // ti)
    return pl.pallas_call(
        functools.partial(_ffn_ln_kernel, eps=eps),
        out_shape=jax.ShapeDtypeStruct((N, H), out_dtype),
        grid=grid,
        in_specs=[
            pl.BlockSpec((tm, H), lambda i, j: (i, 0)),
            pl.BlockSpec((H, ti), lambda i, j: (0, j)),
            pl.BlockSpec((1, ti), lambda i, j: (0, j)),
            pl.BlockSpec((ti, H), lambda i, j: (j, 0)),
            pl.BlockSpec((1, H), lambda i, j: (0, 0)),
            pl.BlockSpec((1, H), lambda i, j: (0, 0)),
            pl.BlockSpec((1, H), lambda i, j: (0, 0)),
        ],
        out_specs=pl.BlockSpec((tm, H), lambda i, j: (i, 0)),
        scratch_shapes=[pltpu.VMEM((tm, H), jnp.float32)],
        compiler_params=pltpu.CompilerParams(
            dimension_semantics=("parallel", "arbitrary"),
            vmem_limit_bytes=cfg.vmem),
    )(x, w1, b1.reshape(1, I).astype(jnp.float32),
      w2, b2.reshape(1, H).astype(jnp.float32),
      gamma.reshape(1, H), beta.reshape(1, H))


# ----------------------------- plain LayerNorm (embeddings) -------------------

def _layernorm_kernel(x_ref, g_ref, b_ref, o_ref, *, eps):
    x = x_ref[...].astype(jnp.float32)
    mean = jnp.mean(x, axis=-1, keepdims=True)
    var = jnp.mean(jnp.square(x - mean), axis=-1, keepdims=True)
    y = (x - mean) * jax.lax.rsqrt(var + eps)
    o_ref[...] = (y * g_ref[...] + b_ref[...]).astype(o_ref.dtype)


def layernorm(x, gamma, beta, eps=1e-12, out_dtype=jnp.bfloat16):
    cfg = _hw()
    N, H = x.shape
    tm = _pick_tile(N, cfg.tm, 16)
    return pl.pallas_call(
        functools.partial(_layernorm_kernel, eps=eps),
        out_shape=jax.ShapeDtypeStruct((N, H), out_dtype),
        grid=(N // tm,),
        in_specs=[
            pl.BlockSpec((tm, H), lambda i: (i, 0)),
            pl.BlockSpec((1, H), lambda i: (0, 0)),
            pl.BlockSpec((1, H), lambda i: (0, 0)),
        ],
        out_specs=pl.BlockSpec((tm, H), lambda i: (i, 0)),
        compiler_params=pltpu.CompilerParams(
            dimension_semantics=("parallel",), vmem_limit_bytes=cfg.vmem),
    )(x, gamma.reshape(1, H), beta.reshape(1, H))


# ----------------------------- attention (grid over batch x head-group) -------

def _attention_kernel(qkv_ref, m_ref, o_ref, *, group, head_dim):
    """One batch x one head-group. qkv block is [Q(g*dh) | K(g*dh) | V(g*dh)];
    the 1/sqrt(dh) scale is pre-folded into the Q weights; output is one
    lane-dense (S, group*dh) store."""
    gdh = group * head_dim
    qkv = qkv_ref[...]                      # (S, 3*g*dh) bf16
    mask = m_ref[0]                         # (1, S) f32 additive key mask
    q = qkv[:, :gdh]
    k = qkv[:, gdh:2 * gdh]
    v = qkv[:, 2 * gdh:3 * gdh]
    outs = []
    for h in range(group):                  # group is 1 or 2 -> tiny live ranges
        lo = h * head_dim
        hi = lo + head_dim
        s = jax.lax.dot_general(q[:, lo:hi], k[:, lo:hi], (((1,), (1,)), ((), ())),
                                preferred_element_type=jnp.float32)
        s = s + mask
        s = s - jnp.max(s, axis=-1, keepdims=True)
        p = jnp.exp(s)
        p = p * pl.reciprocal(jnp.sum(p, axis=-1, keepdims=True), approx=True)
        outs.append(jnp.dot(p.astype(v.dtype), v[:, lo:hi],
                            preferred_element_type=jnp.float32))
    o_ref[...] = jnp.concatenate(outs, axis=-1).astype(o_ref.dtype)


def attention(qkv, mask_add, batch, seq, num_heads):
    """qkv: [B*S, 3H] bf16 packed per head-group; mask_add: [B,1,S] f32 -> [B*S,H]."""
    cfg = _hw()
    BS, threeH = qkv.shape
    H = threeH // 3
    dh = H // num_heads
    group = 2 if num_heads % 2 == 0 else 1
    n_groups = num_heads // group
    gw = 3 * group * dh                     # qkv block width (contiguous Q|K|V)
    ow = group * dh                         # output block width (128 lanes for dh=64)
    # TODO(synk): for long sequences switch to a KV-blocked online-softmax (flash) form.
    return pl.pallas_call(
        functools.partial(_attention_kernel, group=group, head_dim=dh),
        out_shape=jax.ShapeDtypeStruct((BS, H), jnp.bfloat16),
        grid=(batch, n_groups),
        in_specs=[
            pl.BlockSpec((seq, gw), lambda b, g: (b, g)),
            pl.BlockSpec((1, 1, seq), lambda b, g: (b, 0, 0)),
        ],
        out_specs=pl.BlockSpec((seq, ow), lambda b, g: (b, g)),
        compiler_params=pltpu.CompilerParams(
            dimension_semantics=("parallel", "parallel"),
            vmem_limit_bytes=cfg.vmem),
    )(qkv, mask_add)


# ----------------------------- fused pooler + classifier ----------------------

def _pool_cls_kernel(x_ref, wp_ref, bp_ref, wc_ref, bc_ref, o_ref):
    pooled = jnp.tanh(jnp.dot(x_ref[...], wp_ref[...],
                              preferred_element_type=jnp.float32) + bp_ref[...])
    # self.dropout(pooled_output): identity in eval mode
    # TODO(synk): training-mode dropout (config.hidden_dropout_prob) not applied.
    logits = jnp.dot(pooled.astype(wc_ref.dtype), wc_ref[...],
                     preferred_element_type=jnp.float32) + bc_ref[...]
    o_ref[...] = logits.astype(o_ref.dtype)


def pooler_classifier(cls, pool_w, pool_b, cls_w, cls_b):
    """logits = tanh(cls @ Wp + bp) @ Wc + bc, one tiny fused kernel."""
    B, H = cls.shape
    L = cls_w.shape[1]
    return pl.pallas_call(
        _pool_cls_kernel,
        out_shape=jax.ShapeDtypeStruct((B, L), jnp.float32),
        grid=(1,),
        in_specs=[
            pl.BlockSpec((B, H), lambda i: (0, 0)),
            pl.BlockSpec((H, H), lambda i: (0, 0)),
            pl.BlockSpec((1, H), lambda i: (0, 0)),
            pl.BlockSpec((H, L), lambda i: (0, 0)),
            pl.BlockSpec((1, L), lambda i: (0, 0)),
        ],
        out_specs=pl.BlockSpec((B, L), lambda i: (0, 0)),
        compiler_params=pltpu.CompilerParams(dimension_semantics=("arbitrary",)),
    )(cls, pool_w, pool_b.reshape(1, H).astype(jnp.float32),
      cls_w, cls_b.reshape(1, L).astype(jnp.float32))


# --------------------------- Model glue (plain JAX) ---------------------------

def init_params(key, *, vocab, max_pos, type_vocab, hidden, heads, inter,
                layers, num_labels):
    ks = iter(jax.random.split(key, 64))

    def dense(shape):
        return jax.random.normal(next(ks), shape, jnp.float32) * 0.02

    params = {
        "emb_word": dense((vocab, hidden)),
        "emb_pos": dense((max_pos, hidden)),
        "emb_type": dense((type_vocab, hidden)),
        "emb_ln_g": jnp.ones((hidden,), jnp.float32),
        "emb_ln_b": jnp.zeros((hidden,), jnp.float32),
        "layers": [],
        "pool_w": dense((hidden, hidden)),
        "pool_b": jnp.zeros((hidden,), jnp.float32),
        "cls_w": dense((hidden, num_labels)),
        "cls_b": jnp.zeros((num_labels,), jnp.float32),
        "num_heads": heads,
    }
    for _ in range(layers):
        params["layers"].append({
            "q_w": dense((hidden, hidden)), "q_b": jnp.zeros((hidden,), jnp.float32),
            "k_w": dense((hidden, hidden)), "k_b": jnp.zeros((hidden,), jnp.float32),
            "v_w": dense((hidden, hidden)), "v_b": jnp.zeros((hidden,), jnp.float32),
            "o_w": dense((hidden, hidden)), "o_b": jnp.zeros((hidden,), jnp.float32),
            "ln1_g": jnp.ones((hidden,), jnp.float32), "ln1_b": jnp.zeros((hidden,), jnp.float32),
            "ff1_w": dense((hidden, inter)), "ff1_b": jnp.zeros((inter,), jnp.float32),
            "ff2_w": dense((inter, hidden)), "ff2_b": jnp.zeros((hidden,), jnp.float32),
            "ln2_g": jnp.ones((hidden,), jnp.float32), "ln2_b": jnp.zeros((hidden,), jnp.float32),
        })
    return params


def _pack_qkv(q_w, k_w, v_w, q_b, k_b, v_b, num_heads):
    """Pack Q/K/V per head-group so the attention kernel reads one contiguous
    [Q|K|V] slab per group and writes 128-lane output blocks. Folds 1/sqrt(dh)
    into the Q columns."""
    H = q_w.shape[0]
    dh = H // num_heads
    group = 2 if num_heads % 2 == 0 else 1
    ng = num_heads // group
    scale = 1.0 / float(dh) ** 0.5
    qw = (q_w * scale).reshape(H, ng, group * dh)
    kw = k_w.reshape(H, ng, group * dh)
    vw = v_w.reshape(H, ng, group * dh)
    w = jnp.concatenate([qw, kw, vw], axis=2).reshape(H, 3 * H)
    qb = (q_b * scale).reshape(ng, group * dh)
    kb = k_b.reshape(ng, group * dh)
    vb = v_b.reshape(ng, group * dh)
    b = jnp.concatenate([qb, kb, vb], axis=1).reshape(3 * H)
    return w.astype(jnp.bfloat16), b


def prepare_params(raw):
    """Fuse + regroup Q/K/V weights, fold the attention scale, cast matmul weights
    and embedding tables to bf16 (biases / LN params stay f32)."""
    nh = raw["num_heads"]
    p = {
        "emb_word": raw["emb_word"].astype(jnp.bfloat16),
        "emb_pos": raw["emb_pos"].astype(jnp.bfloat16),
        "emb_type": raw["emb_type"].astype(jnp.bfloat16),
        "emb_ln_g": raw["emb_ln_g"], "emb_ln_b": raw["emb_ln_b"],
        "pool_w": raw["pool_w"].astype(jnp.bfloat16), "pool_b": raw["pool_b"],
        "cls_w": raw["cls_w"].astype(jnp.bfloat16), "cls_b": raw["cls_b"],
        "num_heads": nh,
        "layers": [],
    }
    for lp in raw["layers"]:
        qkv_w, qkv_b = _pack_qkv(lp["q_w"], lp["k_w"], lp["v_w"],
                                 lp["q_b"], lp["k_b"], lp["v_b"], nh)
        p["layers"].append({
            "qkv_w": qkv_w, "qkv_b": qkv_b,
            "o_w": lp["o_w"].astype(jnp.bfloat16), "o_b": lp["o_b"],
            "ln1_g": lp["ln1_g"], "ln1_b": lp["ln1_b"],
            "ff1_w": lp["ff1_w"].astype(jnp.bfloat16), "ff1_b": lp["ff1_b"],
            "ff2_w": lp["ff2_w"].astype(jnp.bfloat16), "ff2_b": lp["ff2_b"],
            "ln2_g": lp["ln2_g"], "ln2_b": lp["ln2_b"],
        })
    return p


def encoder_layer(p, num_heads, x, mask_add, batch, seq):
    """x: [B*S, H] bf16 -> [B*S, H] bf16."""
    qkv = linear(x, p["qkv_w"], p["qkv_b"])                       # fused Q|K|V [B*S, 3H]
    ctx = attention(qkv, mask_add, batch, seq, num_heads)         # [B*S, H]
    # output projection + residual + LN1 fused in one kernel epilogue
    x1 = linear_add_layernorm(ctx, p["o_w"], p["o_b"], x, p["ln1_g"], p["ln1_b"])
    # ff1 + gelu + ff2 + residual + LN2 fused in one kernel
    x2 = ffn_add_layernorm(x1, p["ff1_w"], p["ff1_b"], p["ff2_w"], p["ff2_b"],
                           p["ln2_g"], p["ln2_b"])
    return x2


def categorizer_forward(params, input_ids, attention_mask, token_type_ids):
    """Semantics of CategorizerModel.forward: BERT -> pooled_output -> dropout -> classifier."""
    B, S = input_ids.shape
    H = params["emb_word"].shape[1]

    # Embeddings (gathers are plain-JAX glue, tables in bf16; LN is a Pallas kernel)
    pos_ids = jnp.arange(S)
    emb = (jnp.take(params["emb_word"], input_ids, axis=0)
           + jnp.take(params["emb_pos"], pos_ids, axis=0)[None, :, :]
           + jnp.take(params["emb_type"], token_type_ids, axis=0))
    x = layernorm(emb.reshape(B * S, H), params["emb_ln_g"], params["emb_ln_b"])  # bf16

    # Additive attention mask, [B, 1, S] (HF BERT uses -10000 for masked keys)
    mask_add = ((1.0 - attention_mask.astype(jnp.float32)) * -10000.0).reshape(B, 1, S)

    for layer_p in params["layers"]:
        x = encoder_layer(layer_p, params["num_heads"], x, mask_add, B, S)

    # BERT pooler (tanh dense on [CLS]) + dropout (eval identity) + classifier, fused
    cls = x.reshape(B, S, H)[:, 0, :]                              # (B, H) bf16
    logits = pooler_classifier(cls, params["pool_w"], params["pool_b"],
                               params["cls_w"], params["cls_b"])
    return logits


# ---------------------------------- main --------------------------------------

if __name__ == "__main__":
    B, S = 2, 8
    HIDDEN, HEADS, INTER, LAYERS = 32, 2, 64, 2
    VOCAB, MAX_POS, TYPE_VOCAB, NUM_LABELS = 100, 16, 2, 10

    key = jax.random.PRNGKey(0)
    k_param, k_ids = jax.random.split(key)

    raw_params = init_params(k_param, vocab=VOCAB, max_pos=MAX_POS, type_vocab=TYPE_VOCAB,
                             hidden=HIDDEN, heads=HEADS, inter=INTER, layers=LAYERS,
                             num_labels=NUM_LABELS)
    params = prepare_params(raw_params)

    input_ids = jax.random.randint(k_ids, (B, S), 0, VOCAB, dtype=jnp.int32)
    attention_mask = jnp.ones((B, S), jnp.int32).at[1, 6:].set(0)   # second seq padded
    token_type_ids = jnp.zeros((B, S), jnp.int32)

    logits = categorizer_forward(params, input_ids, attention_mask, token_type_ids)
    logits = jax.block_until_ready(logits)
    assert logits.shape == (B, NUM_LABELS) and logits.dtype == jnp.float32
    print("KERNEL_OK")
</pallas_src>

<mosaic_0001>
module attributes {stable_mosaic.version = 11 : i64} {
  func.func @_layernorm_kernel(%arg0: i32, %arg1: memref<16x32xbf16, #tpu.memory_space<vmem>>, %arg2: memref<1x32xf32, #tpu.memory_space<vmem>>, %arg3: memref<1x32xf32, #tpu.memory_space<vmem>>, %arg4: memref<16x32xbf16, #tpu.memory_space<vmem>>) attributes {dimension_semantics = [#tpu.dimension_semantics<parallel>], iteration_bounds = array<i64: 1>, scalar_prefetch = 0 : i64, scratch_operands = 0 : i64, tpu.core_type = #tpu.core_type<tc>, window_params = [{transform_indices = @transform_0, window_bounds = array<i64: 16, 32>}, {pipeline_mode = #tpu.pipeline_mode<synchronous>, transform_indices = @transform_1, window_bounds = array<i64: 1, 32>}, {pipeline_mode = #tpu.pipeline_mode<synchronous>, transform_indices = @transform_2, window_bounds = array<i64: 1, 32>}, {transform_indices = @transform_3, window_bounds = array<i64: 16, 32>}]} {
    %c0 = arith.constant 0 : index
    %c0_0 = arith.constant 0 : index
    %0 = vector.load %arg1[%c0, %c0_0] : memref<16x32xbf16, #tpu.memory_space<vmem>>, vector<16x32xbf16>
    %1 = arith.extf %0 : vector<16x32xbf16> to vector<16x32xf32>
    %cst = arith.constant dense<0.000000e+00> : vector<16xf32>
    %2 = vector.multi_reduction <add>, %1, %cst [1] : vector<16x32xf32> to vector<16xf32>
    %3 = vector.shape_cast %2 : vector<16xf32> to vector<16x1xf32>
    %cst_1 = arith.constant 3.200000e+01 : f32
    %4 = vector.broadcast %cst_1 : f32 to vector<16x1xf32>
    %5 = arith.divf %3, %4 : vector<16x1xf32>
    %6 = vector.broadcast %5 : vector<16x1xf32> to vector<16x32xf32>
    %7 = arith.subf %1, %6 : vector<16x32xf32>
    %8 = arith.mulf %7, %7 : vector<16x32xf32>
    %cst_2 = arith.constant dense<0.000000e+00> : vector<16xf32>
    %9 = vector.multi_reduction <add>, %8, %cst_2 [1] : vector<16x32xf32> to vector<16xf32>
    %10 = vector.shape_cast %9 : vector<16xf32> to vector<16x1xf32>
    %cst_3 = arith.constant 3.200000e+01 : f32
    %11 = vector.broadcast %cst_3 : f32 to vector<16x1xf32>
    %12 = arith.divf %10, %11 : vector<16x1xf32>
    %13 = vector.broadcast %5 : vector<16x1xf32> to vector<16x32xf32>
    %14 = arith.subf %1, %13 : vector<16x32xf32>
    %cst_4 = arith.constant 9.99999996E-13 : f32
    %15 = vector.broadcast %cst_4 : f32 to vector<16x1xf32>
    %16 = arith.addf %12, %15 : vector<16x1xf32>
    %17 = math.rsqrt %16 : vector<16x1xf32>
    %18 = vector.broadcast %17 : vector<16x1xf32> to vector<16x32xf32>
    %19 = arith.mulf %14, %18 : vector<16x32xf32>
    %c0_5 = arith.constant 0 : index
    %c0_6 = arith.constant 0 : index
    %20 = vector.load %arg2[%c0_5, %c0_6] : memref<1x32xf32, #tpu.memory_space<vmem>>, vector<1x32xf32>
    %21 = vector.broadcast %20 : vector<1x32xf32> to vector<16x32xf32>
    %22 = arith.mulf %19, %21 : vector<16x32xf32>
    %c0_7 = arith.constant 0 : index
    %c0_8 = arith.constant 0 : index
    %23 = vector.load %arg3[%c0_7, %c0_8] : memref<1x32xf32, #tpu.memory_space<vmem>>, vector<1x32xf32>
    %24 = vector.broadcast %23 : vector<1x32xf32> to vector<16x32xf32>
    %25 = arith.addf %22, %24 : vector<16x32xf32>
    %26 = arith.truncf %25 : vector<16x32xf32> to vector<16x32xbf16>
    %c0_9 = arith.constant 0 : index
    %c0_10 = arith.constant 0 : index
    %27 = vector.load %arg4[%c0_9, %c0_10] : memref<16x32xbf16, #tpu.memory_space<vmem>>, vector<16x32xbf16>
    tpu.vector_store %arg4[%c0_9, %c0_10], %26 {strides = array<i32>} : memref<16x32xbf16, #tpu.memory_space<vmem>>, vector<16x32xbf16>,
    return
  }
  func.func @transform_0(%arg0: i32) -> (i32, i32) {
    %c0_i32 = arith.constant 0 : i32
    %c0_i32_0 = arith.constant 0 : i32
    return %arg0, %c0_i32 : i32, i32
  }
  func.func @transform_1(%arg0: i32) -> (i32, i32) {
    %c0_i32 = arith.constant 0 : i32
    %c0_i32_0 = arith.constant 0 : i32
    %c0_i32_1 = arith.constant 0 : i32
    return %c0_i32, %c0_i32_0 : i32, i32
  }
  func.func @transform_2(%arg0: i32) -> (i32, i32) {
    %c0_i32 = arith.constant 0 : i32
    %c0_i32_0 = arith.constant 0 : i32
    %c0_i32_1 = arith.constant 0 : i32
    return %c0_i32, %c0_i32_0 : i32, i32
  }
  func.func @transform_3(%arg0: i32) -> (i32, i32) {
    %c0_i32 = arith.constant 0 : i32
    %c0_i32_0 = arith.constant 0 : i32
    return %arg0, %c0_i32 : i32, i32
  }
}

</mosaic_0001>

<bundles_post_ra>
// kernel: tpu_custom_call.1
= control target key start
LH: loop header
LB: loop body
LE: loop exit
PB: predicated region body
PF: predicated region fallthrough
CT: control target
= control target key end

     0   :  { %8 = vsyncpa [#allocation3], 0  ;;  %s282_s0 = inlined_call_operand.hbm [shape: bf16[16,32], index: 0, kind: input, shape index: {}]   ;;  %s283_s1 = inlined_call_operand.hbm [shape: f32[1,32], index: 1, kind: input, shape index: {}]   ;;  %s284_s2 = inlined_call_operand.vmem [shape: f32[1,32], index: 2, kind: input, shape index: {}]   ;;  %s285_s3 = inlined_call_operand.hbm [shape: bf16[16,32], index: 3, kind: output, shape index: {}]  }
   0x1   :  { %9 = vsyncpa [#allocation6], 0 }
   0x2   :  { %10 = vsyncpa [#allocation4], 0  ;;  %s15_s14 = sshll.u32 %s282_s0, 4  ;;  %s234_s15 = smov [#allocation2]   ;;  %s16_s14 = int_to_ptr.hbm [resolvable:$true] %s15_s14 }
   0x3   :  { %s17_s16 = sshll.u32 %s234_s15, 4  ;;  %s29_s19 = sshll.u32 %s283_s1, 4  ;;  %s18_s16 = int_to_ptr.vmem [resolvable:$true] %s17_s16  ;;  %s30_s19 = int_to_ptr.hbm [resolvable:$true] %s29_s19 }
   0x4   :  { %s235_s20 = smov 64   ;;  %s236_s21 = smov 4  }
   0x5   :  { %23 = dma.hbm_to_vmem [thread:$0]  %s16_s14, 128, %s18_s16, [#allocation3], %s235_s20, %s235_s20, %s236_s21  }
   0x6   :  { %s237_s22 = smov [#allocation5]  }
   0x7   :  { %s31_s23 = sshll.u32 %s237_s22, 4  ;;  %s32_s23 = int_to_ptr.vmem [resolvable:$true] %s31_s23 }
   0x8   :  { %34 = dma.hbm_to_vmem [thread:$0]  %s30_s19, 16, %s32_s23, [#allocation6]  }
   0x9   :  { %228 = dma.done.wait [#allocation3], 128  }
   0xa   :  { %229 = vsyncadd [#allocation3], 4294967168 }
   0xb   :  { %230 = dma.done.wait [#allocation6], 16  }
   0xc   :  { %231 = vsyncadd [#allocation6], 4294967280  ;;  %v139_v0 = vld [vmem:[#allocation2] sm:$0xff]   ;;  %vm49_vm0 = vcmask 261120   ;;  %v238_v5 = vmov 32.0   ;;  %vm115_vm7 = vcmask 257024  }
   0xd   :  { %v140_v1 = vunpack.c.l.bf16 %v139_v0  ;;  %v141_v3 = vunpack.c.h.bf16 %v139_v0  ;;  %150 = vrcp.f32 %v238_v5  ;;  %v148_v36 = vld [vmem:[#allocation5] ss:$0 sm:$0xff]  ;;  %v149_v40 = vld [vmem:[%s284_s2] ss:$0 sm:$0xff]  ;;  %s239_s24 = smov [#allocation7]   ;;  %s124_s2 = sshll.u32 %s285_s3, 4  ;;  %s125_s2 = int_to_ptr.hbm [resolvable:$true] %s124_s2 }
   0xe   :  { %s122_s25 = sshll.u32 %s239_s24, 4  ;;  %s123_s25 = int_to_ptr.vmem [resolvable:$true] %s122_s25 }
   0xf   :  { %v50_v2 = vsel %vm49_vm0, %v140_v1, 0.0  ;;  %v53_v4 = vsel %vm49_vm0, %v141_v3, 0.0 }
  0x10   :  { %51 = vadd.xlane.f32.xlu0 %v50_v2 }
  0x13   :  { %v151_v6 = vpop.eup %150 }
  0x14   :  { %v57_v7 = vmul.f32 32.0, %v151_v6  ;;  %vm61_vm1 = vweird.f32 %v151_v6 }
  0x16   :  { %v58_v8 = vsub.f32 1.0, %v57_v7 }
  0x18   :  { %54 = vadd.xlane.f32.xlu0 %v53_v4  ;;  %v59_v9 = vmul.f32 %v151_v6, %v58_v8 }
  0x1a   :  { %v60_v10 = vadd.f32 %v151_v6, %v59_v9 }
  0x1c   :  { %v62_v11 = vsel %vm61_vm1, %v151_v6, %v60_v10 }
  0x83   :  { %v52_v12 = vpop.xlane.xlu0 %51 }
  0x84   :  { %v63_v13 = vmul.f32 %v62_v11, %v52_v12 }
  0x86   :  { %v65_v14 = vsub.f32 %v140_v1, %v63_v13 }
  0x88   :  { %v67_v15 = vmul.f32 %v65_v14, %v65_v14 }
  0x8a   :  { %v69_v16 = vsel %vm49_vm0, %v67_v15, 0.0 }
  0x8b   :  { %70 = vadd.xlane.f32.xlu1 %v69_v16  ;;  %v55_v17 = vpop.xlane.xlu0 %54 }
  0x8c   :  { %v64_v18 = vmul.f32 %v62_v11, %v55_v17 }
  0x8e   :  { %v66_v19 = vsub.f32 %v141_v3, %v64_v18 }
  0x90   :  { %v68_v20 = vmul.f32 %v66_v19, %v66_v19 }
  0x92   :  { %v72_v21 = vsel %vm49_vm0, %v68_v20, 0.0 }
  0x93   :  { %73 = vadd.xlane.f32.xlu1 %v72_v21 }
  0xfe   :  { %v71_v22 = vpop.xlane.xlu1 %70 }
  0xff   :  { %v75_v23 = vmul.f32 %v71_v22, %v62_v11 }
 0x101   :  { %v77_v24 = vadd.f32 1e-12, %v75_v23 }
 0x103   :  { %152 = vrsqrt.f32 %v77_v24  ;;  %vm85_vm3 = vweird.f32 %v77_v24 }
 0x106   :  { %v74_v25 = vpop.xlane.xlu1 %73 }
 0x107   :  { %v76_v26 = vmul.f32 %v74_v25, %v62_v11 }
 0x109   :  { %v153_v27 = vpop.eup %152  ;;  %v78_v28 = vadd.f32 1e-12, %v76_v26 }
 0x10a   :  { %v80_v29 = vmul.f32 %v153_v27, %v77_v24  ;;  %vm86_vm2 = vweird.f32 %v153_v27 }
 0x10b   :  { %154 = vrsqrt.f32 %v78_v28  ;;  %vm87_vm4 = vmor %vm85_vm3, %vm86_vm2  ;;  %vm95_vm6 = vweird.f32 %v78_v28 }
 0x10c   :  { %v81_v30 = vmul.f32 %v153_v27, %v80_v29 }
 0x10e   :  { %v82_v31 = vmul.f32 0.5, %v81_v30 }
 0x110   :  { %v83_v32 = vsub.f32 1.5, %v82_v31 }
 0x111   :  { %v155_v33 = vpop.eup %154 }
 0x112   :  { %v84_v34 = vmul.f32 %v153_v27, %v83_v32  ;;  %v90_v35 = vmul.f32 %v155_v33, %v78_v28  ;;  %vm96_vm5 = vweird.f32 %v155_v33 }
 0x113   :  { %vm97_vm8 = vmor %vm95_vm6, %vm96_vm5 }
 0x114   :  { %v88_v37 = vsel %vm87_vm4, %v153_v27, %v84_v34  ;;  %v91_v38 = vmul.f32 %v155_v33, %v90_v35 }
 0x115   :  { %v99_v39 = vmul.f32 %v88_v37, %v65_v14 }
 0x116   :  { %v92_v41 = vmul.f32 0.5, %v91_v38 }
 0x117   :  { %v105_v42 = vmul.f32 %v148_v36, %v99_v39 }
 0x118   :  { %v93_v43 = vsub.f32 1.5, %v92_v41 }
 0x119   :  { %v111_v44 = vadd.f32 %v149_v40, %v105_v42 }
 0x11a   :  { %v94_v45 = vmul.f32 %v155_v33, %v93_v43 }
 0x11b   :  { %v113_v46 = vpack.c.bf16 %v111_v44, %v111_v44 }
 0x11c   :  { %v98_v47 = vsel %vm97_vm8, %v155_v33, %v94_v45 }
 0x11d   :  { %v100_v48 = vmul.f32 %v98_v47, %v66_v19  ;;  %116 = vst.msk [vmem:[#allocation7] sm:$0xf] %vm115_vm7, %v113_v46 }
 0x11f   :  { %v106_v49 = vmul.f32 %v148_v36, %v100_v48 }
 0x121   :  { %v112_v50 = vadd.f32 %v149_v40, %v106_v49 }
 0x123   :  { %v114_v51 = vpack.c.bf16 %v112_v50, %v112_v50 }
 0x125   :  { %117 = vst.msk [vmem:[#allocation7 + $0x4] sm:$0xf] %vm115_vm7, %v114_v51 }
 0x126   :  { %130 = dma.vmem_to_hbm [thread:$0]  %s123_s25, 128, %s125_s2, [#allocation4], %s235_s20, %s235_s20, %s236_s21  }
 0x127   :  { %232 = dma.done.wait [#allocation4], 128  }
 0x128   :  { %233 = vsyncadd [#allocation4], 4294967168 }
 0x129   :  { %135 = vsyncpa [#allocation3], 1 }
 0x12a   :  { %136 = vsyncpa [#allocation6], 1 }
 0x12b   :  { %137 = vsyncpa [#allocation4], 1 }

</bundles_post_ra>
